<compile_context>
chip_gen: v7x
topology: tpu7x:2x2x1
jax: 0.10.0
libtpu: 0.0.40
codegen_flags: <defaults>
</compile_context>

<pallas_src>
import functools

import jax
import jax.numpy as jnp
import numpy as np
from jax.experimental import pallas as pl
from jax.experimental.pallas import tpu as pltpu


# --------------------------------------------------------------------------
# Host-side weight re-packing: fold the horizontal (kw) taps and the W-edge
# zero padding of a 3x3 conv into a block-Toeplitz matrix per vertical tap.
#   big[kh][(w+kw-1)*Cin + ci, w*Cout + co] = w_oihw[co, ci, kh, kw]
#     (entries with w+kw-1 outside [0, W) are simply absent -> zero padding)
# --------------------------------------------------------------------------
def _conv3x3_to_toeplitz(w_oihw, W):
    Cout, Cin, KH, KW = w_oihw.shape
    wt = jnp.transpose(w_oihw, (2, 3, 1, 0)).astype(jnp.float32)  # [KH, KW, Cin, Cout]
    mats = []
    for kh in range(KH):
        # E[p, ci, w, co] with p = w + kw (padded column coordinate)
        E = jnp.zeros((W + 2, Cin, W, Cout), jnp.float32)
        for kw in range(KW):
            D = jnp.eye(W + 2, W, k=-kw, dtype=jnp.float32)       # D[w+kw, w] = 1
            E = E + D[:, None, :, None] * wt[kh, kw][None, :, None, :]
        mats.append(E[1:W + 1].reshape(W * Cin, W * Cout))         # drop padded cols
    return jnp.stack(mats)                                         # [3, W*Cin, W*Cout]


def _conv1x1_to_blockdiag(ws_oihw, W):
    # big[w*Cin + ci, w*Cout + co] = ws[co, ci]
    Cout, Cin = ws_oihw.shape[0], ws_oihw.shape[1]
    wst = jnp.transpose(ws_oihw[:, :, 0, 0], (1, 0)).astype(jnp.float32)  # [Cin, Cout]
    eyeW = jnp.eye(W, dtype=jnp.float32)
    big = eyeW[:, None, :, None] * wst[None, :, None, :]                  # [W,Cin,W,Cout]
    return big.reshape(W * Cin, W * Cout)


# --------------------------------------------------------------------------
# Fused kernel: one image (one grid step) per invocation.
# --------------------------------------------------------------------------
def basic_block_kernel(x_ref, w1_ref, w2_ref, ws_ref, out_ref,
                       xpad_ref, h1pad_ref, *, equal_in_out):
    """
    x_ref    : [1, H, W*Cin]      f32   input image (channels folded onto lanes)
    w1_ref   : [3, W*Cin, W*Cout] bf16  conv1 block-Toeplitz weights (per kh tap)
    w2_ref   : [3, W*Cout, W*Cout]bf16  conv2 block-Toeplitz weights
    ws_ref   : [W*Cin, W*Cout]    bf16  1x1 shortcut block-diag (unused if equal)
    out_ref  : [1, H, W*Cout]     f32
    xpad_ref : [H+2, W*Cin]       f32 scratch (vertical zero halo for conv1)
    h1pad_ref: [H+2, W*Cout]      f32 scratch (vertical zero halo for conv2)
    """
    H = x_ref.shape[1]
    wc_in = x_ref.shape[2]
    wc_out = out_ref.shape[2]

    x = x_ref[0]                               # [H, W*Cin]  pre-activation input
    xr = jnp.maximum(x, 0.0)                   # relu1 (bn1 == identity), f32 VPU

    # Vertical zero halo only (1 row top/bottom); horizontal padding is already
    # folded into the Toeplitz weights, so no misaligned lane writes.
    xpad_ref[0:1, :] = jnp.zeros((1, wc_in), xpad_ref.dtype)
    xpad_ref[H + 1:H + 2, :] = jnp.zeros((1, wc_in), xpad_ref.dtype)
    xpad_ref[1:H + 1, :] = xr

    # ---- conv1 (3x3, pad 1): 3 row-tap MXU matmuls, K=W*Cin, N=W*Cout ----
    acc1 = jnp.zeros((H, wc_out), jnp.float32)
    for kh in range(3):
        a = xpad_ref[kh:kh + H, :].astype(jnp.bfloat16)
        acc1 = acc1 + jnp.dot(a, w1_ref[kh], preferred_element_type=jnp.float32)
    h1 = jnp.maximum(acc1, 0.0)                # relu2 (bn2 == identity)

    h1pad_ref[0:1, :] = jnp.zeros((1, wc_out), h1pad_ref.dtype)
    h1pad_ref[H + 1:H + 2, :] = jnp.zeros((1, wc_out), h1pad_ref.dtype)
    h1pad_ref[1:H + 1, :] = h1

    # ---- conv2 (3x3, pad 1) ----
    acc2 = jnp.zeros((H, wc_out), jnp.float32)
    for kh in range(3):
        a = h1pad_ref[kh:kh + H, :].astype(jnp.bfloat16)
        acc2 = acc2 + jnp.dot(a, w2_ref[kh], preferred_element_type=jnp.float32)

    # ---- residual / shortcut ----
    if equal_in_out:
        shortcut = x                           # identity residual uses pre-relu x
    else:
        shortcut = jnp.dot(xr.astype(jnp.bfloat16), ws_ref[...],
                           preferred_element_type=jnp.float32)

    out_ref[0] = (shortcut + acc2).astype(out_ref.dtype)


# --------------------------------------------------------------------------
# Public wrapper: PyTorch-style NCHW / OIHW in, NCHW out.
# --------------------------------------------------------------------------
def basic_block_forward(x_nchw, w1_oihw, w2_oihw, ws_oihw, *, stride=1):
    assert stride == 1, "TODO(synk): stride > 1 not implemented in the Pallas kernel"
    x = jnp.transpose(x_nchw, (0, 2, 3, 1)).astype(jnp.float32)    # -> NHWC
    N, H, W, Cin = x.shape
    Cout = w1_oihw.shape[0]
    equal_in_out = (Cin == Cout)

    x2d = x.reshape(N, H, W * Cin)                                  # lane dim = W*Cin

    w1_big = _conv3x3_to_toeplitz(w1_oihw, W).astype(jnp.bfloat16)  # [3, W*Cin, W*Cout]
    w2_big = _conv3x3_to_toeplitz(w2_oihw, W).astype(jnp.bfloat16)  # [3, W*Cout, W*Cout]
    if ws_oihw is not None:
        ws_big = _conv1x1_to_blockdiag(ws_oihw, W).astype(jnp.bfloat16)
    else:
        ws_big = jnp.zeros((W * Cin, W * Cout), jnp.bfloat16)       # unused

    wc_in, wc_out = W * Cin, W * Cout

    flops = int(N * H * wc_out * (6 * wc_in + 6 * wc_out
                                  + (0 if equal_in_out else 2 * wc_in)))
    bytes_accessed = int(x2d.size * 4 + N * H * wc_out * 4
                         + w1_big.size * 2 + w2_big.size * 2 + ws_big.size * 2)

    out2d = pl.pallas_call(
        functools.partial(basic_block_kernel, equal_in_out=equal_in_out),
        out_shape=jax.ShapeDtypeStruct((N, H, wc_out), jnp.float32),
        grid_spec=pltpu.PrefetchScalarGridSpec(
            num_scalar_prefetch=0,
            grid=(N,),                                             # one image per step
            in_specs=[
                pl.BlockSpec((1, H, wc_in), lambda n: (n, 0, 0)),
                pl.BlockSpec((3, wc_in, wc_out), lambda n: (0, 0, 0)),   # resident
                pl.BlockSpec((3, wc_out, wc_out), lambda n: (0, 0, 0)),  # resident
                pl.BlockSpec((wc_in, wc_out), lambda n: (0, 0)),         # resident
            ],
            out_specs=pl.BlockSpec((1, H, wc_out), lambda n: (n, 0, 0)),
            scratch_shapes=[
                pltpu.VMEM((H + 2, wc_in), jnp.float32),
                pltpu.VMEM((H + 2, wc_out), jnp.float32),
            ]),
        compiler_params=pltpu.CompilerParams(
            dimension_semantics=("parallel",),       # shard batch across TCs (v7x)
            vmem_limit_bytes=32 * 1024 * 1024),
        cost_estimate=pl.CostEstimate(flops=flops, transcendentals=0,
                                      bytes_accessed=bytes_accessed),
    )(x2d, w1_big, w2_big, ws_big)

    out = out2d.reshape(N, H, W, Cout)
    return jnp.transpose(out, (0, 3, 1, 2))                         # -> NCHW


# ---------------- pure-JAX reference (for correctness check) ----------------
def _conv(x, w, stride, pad):
    return jax.lax.conv_general_dilated(
        x, w, (stride, stride), [(pad, pad), (pad, pad)],
        dimension_numbers=('NCHW', 'OIHW', 'NCHW'),
        precision=jax.lax.Precision.HIGHEST)


def basic_block_ref(x, w1, w2, ws, *, stride=1):
    equal_in_out = x.shape[1] == w1.shape[0]
    if not equal_in_out:
        x = jnp.maximum(x, 0.0)
        feed = x
    else:
        feed = jnp.maximum(x, 0.0)
    out = jnp.maximum(_conv(feed, w1, stride, 1), 0.0)
    out = _conv(out, w2, 1, 1)
    short = x if equal_in_out else _conv(x, ws, stride, 0)
    return short + out


def _init_weight(key, shape):
    fan_in = shape[1] * shape[2] * shape[3]
    return (jax.random.normal(key, shape, jnp.float32)
            * (2.0 / fan_in) ** 0.5)


if __name__ == "__main__":
    key = jax.random.PRNGKey(0)
    kx, k1, k2, k3, kx2, k4, k5 = jax.random.split(key, 7)

    # Kernel uses bf16 MXU operands with f32 accumulation; reference is pure
    # f32, so tolerances account for bf16 quantization of weights/activations.
    RTOL, ATOL = 2e-2, 5e-2

    # ---- config A: in_planes != out_planes  (convShortcut path) ----
    N, Cin, Cout, H, W = 2, 4, 8, 16, 16
    x = jax.random.normal(kx, (N, Cin, H, W), jnp.float32)
    w1 = _init_weight(k1, (Cout, Cin, 3, 3))
    w2 = _init_weight(k2, (Cout, Cout, 3, 3))
    ws = _init_weight(k3, (Cout, Cin, 1, 1))

    y = jax.block_until_ready(basic_block_forward(x, w1, w2, ws, stride=1))
    y_ref = basic_block_ref(x, w1, w2, ws, stride=1)
    np.testing.assert_allclose(np.asarray(y), np.asarray(y_ref),
                               rtol=RTOL, atol=ATOL)

    # ---- config B: in_planes == out_planes  (identity shortcut path) ----
    Ceq = 8
    x2 = jax.random.normal(kx2, (N, Ceq, H, W), jnp.float32)
    w1b = _init_weight(k4, (Ceq, Ceq, 3, 3))
    w2b = _init_weight(k5, (Ceq, Ceq, 3, 3))

    y2 = jax.block_until_ready(basic_block_forward(x2, w1b, w2b, None, stride=1))
    y2_ref = basic_block_ref(x2, w1b, w2b, None, stride=1)
    np.testing.assert_allclose(np.asarray(y2), np.asarray(y2_ref),
                               rtol=RTOL, atol=ATOL)

    print("KERNEL_OK")
</pallas_src>

<mosaic_0001>
module attributes {stable_mosaic.version = 11 : i64} {
  func.func @basic_block_kernel(%arg0: i32, %arg1: memref<1x16x64xf32, #tpu.memory_space<vmem>>, %arg2: memref<3x64x128xbf16, #tpu.memory_space<vmem>>, %arg3: memref<3x128x128xbf16, #tpu.memory_space<vmem>>, %arg4: memref<64x128xbf16, #tpu.memory_space<vmem>>, %arg5: memref<1x16x128xf32, #tpu.memory_space<vmem>>, %arg6: memref<18x64xf32, #tpu.memory_space<vmem>>, %arg7: memref<18x128xf32, #tpu.memory_space<vmem>>) attributes {dimension_semantics = [#tpu.dimension_semantics<parallel>], iteration_bounds = array<i64: 2>, scalar_prefetch = 0 : i64, scratch_operands = 2 : i64, tpu.core_type = #tpu.core_type<tc>, window_params = [{transform_indices = @transform_0, window_bounds = array<i64: 1, 16, 64>}, {pipeline_mode = #tpu.pipeline_mode<synchronous>, transform_indices = @transform_1, window_bounds = array<i64: 3, 64, 128>}, {pipeline_mode = #tpu.pipeline_mode<synchronous>, transform_indices = @transform_2, window_bounds = array<i64: 3, 128, 128>}, {pipeline_mode = #tpu.pipeline_mode<synchronous>, transform_indices = @transform_3, window_bounds = array<i64: 64, 128>}, {transform_indices = @transform_4, window_bounds = array<i64: 1, 16, 128>}]} {
    %c0 = arith.constant 0 : index
    %c0_0 = arith.constant 0 : index
    %c0_1 = arith.constant 0 : index
    %0 = vector.load %arg1[%c0, %c0_0, %c0_1] : memref<1x16x64xf32, #tpu.memory_space<vmem>>, vector<1x16x64xf32>
    %1 = vector.shape_cast %0 : vector<1x16x64xf32> to vector<16x64xf32>
    %cst = arith.constant 0.000000e+00 : f32
    %2 = vector.broadcast %cst : f32 to vector<16x64xf32>
    %3 = arith.maximumf %1, %2 : vector<16x64xf32>
    %cst_2 = arith.constant 0.000000e+00 : f32
    %4 = vector.broadcast %cst_2 : f32 to vector<1x64xf32>
    %c0_3 = arith.constant 0 : index
    %c0_4 = arith.constant 0 : index
    %5 = vector.load %arg6[%c0_3, %c0_4] : memref<18x64xf32, #tpu.memory_space<vmem>>, vector<1x64xf32>
    tpu.vector_store %arg6[%c0_3, %c0_4], %4 {strides = array<i32>} : memref<18x64xf32, #tpu.memory_space<vmem>>, vector<1x64xf32>,
    %cst_5 = arith.constant 0.000000e+00 : f32
    %6 = vector.broadcast %cst_5 : f32 to vector<1x64xf32>
    %c17 = arith.constant 17 : index
    %c0_6 = arith.constant 0 : index
    %7 = vector.load %arg6[%c17, %c0_6] : memref<18x64xf32, #tpu.memory_space<vmem>>, vector<1x64xf32>
    tpu.vector_store %arg6[%c17, %c0_6], %6 {strides = array<i32>} : memref<18x64xf32, #tpu.memory_space<vmem>>, vector<1x64xf32>,
    %c1 = arith.constant 1 : index
    %c0_7 = arith.constant 0 : index
    %8 = vector.load %arg6[%c1, %c0_7] : memref<18x64xf32, #tpu.memory_space<vmem>>, vector<16x64xf32>
    tpu.vector_store %arg6[%c1, %c0_7], %3 {strides = array<i32>} : memref<18x64xf32, #tpu.memory_space<vmem>>, vector<16x64xf32>,
    %cst_8 = arith.constant 0.000000e+00 : f32
    %9 = vector.broadcast %cst_8 : f32 to vector<16x128xf32>
    %c0_9 = arith.constant 0 : index
    %c0_10 = arith.constant 0 : index
    %10 = vector.load %arg6[%c0_9, %c0_10] : memref<18x64xf32, #tpu.memory_space<vmem>>, vector<16x64xf32>
    %11 = arith.truncf %10 : vector<16x64xf32> to vector<16x64xbf16>
    %c0_11 = arith.constant 0 : index
    %c0_12 = arith.constant 0 : index
    %c0_13 = arith.constant 0 : index
    %12 = vector.load %arg2[%c0_11, %c0_12, %c0_13] : memref<3x64x128xbf16, #tpu.memory_space<vmem>>, vector<1x64x128xbf16>
    %13 = vector.shape_cast %12 : vector<1x64x128xbf16> to vector<64x128xbf16>
    %cst_14 = arith.constant dense<0.000000e+00> : vector<16x128xf32>
    %14 = tpu.matmul %11, %13, %cst_14 {dimension_numbers = #tpu.dot_dimension_numbers<[1], [0], [0], [1], [0, 0, 1, 1], [], []>} : vector<16x64xbf16>, vector<64x128xbf16>, vector<16x128xf32> -> vector<16x128xf32>
    %15 = arith.addf %9, %14 : vector<16x128xf32>
    %c1_15 = arith.constant 1 : index
    %c0_16 = arith.constant 0 : index
    %16 = vector.load %arg6[%c1_15, %c0_16] : memref<18x64xf32, #tpu.memory_space<vmem>>, vector<16x64xf32>
    %17 = arith.truncf %16 : vector<16x64xf32> to vector<16x64xbf16>
    %c1_17 = arith.constant 1 : index
    %c0_18 = arith.constant 0 : index
    %c0_19 = arith.constant 0 : index
    %18 = vector.load %arg2[%c1_17, %c0_18, %c0_19] : memref<3x64x128xbf16, #tpu.memory_space<vmem>>, vector<1x64x128xbf16>
    %19 = vector.shape_cast %18 : vector<1x64x128xbf16> to vector<64x128xbf16>
    %cst_20 = arith.constant dense<0.000000e+00> : vector<16x128xf32>
    %20 = tpu.matmul %17, %19, %cst_20 {dimension_numbers = #tpu.dot_dimension_numbers<[1], [0], [0], [1], [0, 0, 1, 1], [], []>} : vector<16x64xbf16>, vector<64x128xbf16>, vector<16x128xf32> -> vector<16x128xf32>
    %21 = arith.addf %15, %20 : vector<16x128xf32>
    %c2 = arith.constant 2 : index
    %c0_21 = arith.constant 0 : index
    %22 = vector.load %arg6[%c2, %c0_21] : memref<18x64xf32, #tpu.memory_space<vmem>>, vector<16x64xf32>
    %23 = arith.truncf %22 : vector<16x64xf32> to vector<16x64xbf16>
    %c2_22 = arith.constant 2 : index
    %c0_23 = arith.constant 0 : index
    %c0_24 = arith.constant 0 : index
    %24 = vector.load %arg2[%c2_22, %c0_23, %c0_24] : memref<3x64x128xbf16, #tpu.memory_space<vmem>>, vector<1x64x128xbf16>
    %25 = vector.shape_cast %24 : vector<1x64x128xbf16> to vector<64x128xbf16>
    %cst_25 = arith.constant dense<0.000000e+00> : vector<16x128xf32>
    %26 = tpu.matmul %23, %25, %cst_25 {dimension_numbers = #tpu.dot_dimension_numbers<[1], [0], [0], [1], [0, 0, 1, 1], [], []>} : vector<16x64xbf16>, vector<64x128xbf16>, vector<16x128xf32> -> vector<16x128xf32>
    %27 = arith.addf %21, %26 : vector<16x128xf32>
    %cst_26 = arith.constant 0.000000e+00 : f32
    %28 = vector.broadcast %cst_26 : f32 to vector<16x128xf32>
    %29 = arith.maximumf %27, %28 : vector<16x128xf32>
    %cst_27 = arith.constant 0.000000e+00 : f32
    %30 = vector.broadcast %cst_27 : f32 to vector<1x128xf32>
    %c0_28 = arith.constant 0 : index
    %c0_29 = arith.constant 0 : index
    %31 = vector.load %arg7[%c0_28, %c0_29] : memref<18x128xf32, #tpu.memory_space<vmem>>, vector<1x128xf32>
    tpu.vector_store %arg7[%c0_28, %c0_29], %30 {strides = array<i32>} : memref<18x128xf32, #tpu.memory_space<vmem>>, vector<1x128xf32>,
    %cst_30 = arith.constant 0.000000e+00 : f32
    %32 = vector.broadcast %cst_30 : f32 to vector<1x128xf32>
    %c17_31 = arith.constant 17 : index
    %c0_32 = arith.constant 0 : index
    %33 = vector.load %arg7[%c17_31, %c0_32] : memref<18x128xf32, #tpu.memory_space<vmem>>, vector<1x128xf32>
    tpu.vector_store %arg7[%c17_31, %c0_32], %32 {strides = array<i32>} : memref<18x128xf32, #tpu.memory_space<vmem>>, vector<1x128xf32>,
    %c1_33 = arith.constant 1 : index
    %c0_34 = arith.constant 0 : index
    %34 = vector.load %arg7[%c1_33, %c0_34] : memref<18x128xf32, #tpu.memory_space<vmem>>, vector<16x128xf32>
    tpu.vector_store %arg7[%c1_33, %c0_34], %29 {strides = array<i32>} : memref<18x128xf32, #tpu.memory_space<vmem>>, vector<16x128xf32>,
    %cst_35 = arith.constant 0.000000e+00 : f32
    %35 = vector.broadcast %cst_35 : f32 to vector<16x128xf32>
    %c0_36 = arith.constant 0 : index
    %c0_37 = arith.constant 0 : index
    %36 = vector.load %arg7[%c0_36, %c0_37] : memref<18x128xf32, #tpu.memory_space<vmem>>, vector<16x128xf32>
    %37 = arith.truncf %36 : vector<16x128xf32> to vector<16x128xbf16>
    %c0_38 = arith.constant 0 : index
    %c0_39 = arith.constant 0 : index
    %c0_40 = arith.constant 0 : index
    %38 = vector.load %arg3[%c0_38, %c0_39, %c0_40] : memref<3x128x128xbf16, #tpu.memory_space<vmem>>, vector<1x128x128xbf16>
    %39 = vector.shape_cast %38 : vector<1x128x128xbf16> to vector<128x128xbf16>
    %cst_41 = arith.constant dense<0.000000e+00> : vector<16x128xf32>
    %40 = tpu.matmul %37, %39, %cst_41 {dimension_numbers = #tpu.dot_dimension_numbers<[1], [0], [0], [1], [0, 0, 1, 1], [], []>} : vector<16x128xbf16>, vector<128x128xbf16>, vector<16x128xf32> -> vector<16x128xf32>
    %41 = arith.addf %35, %40 : vector<16x128xf32>
    %c1_42 = arith.constant 1 : index
    %c0_43 = arith.constant 0 : index
    %42 = vector.load %arg7[%c1_42, %c0_43] : memref<18x128xf32, #tpu.memory_space<vmem>>, vector<16x128xf32>
    %43 = arith.truncf %42 : vector<16x128xf32> to vector<16x128xbf16>
    %c1_44 = arith.constant 1 : index
    %c0_45 = arith.constant 0 : index
    %c0_46 = arith.constant 0 : index
    %44 = vector.load %arg3[%c1_44, %c0_45, %c0_46] : memref<3x128x128xbf16, #tpu.memory_space<vmem>>, vector<1x128x128xbf16>
    %45 = vector.shape_cast %44 : vector<1x128x128xbf16> to vector<128x128xbf16>
    %cst_47 = arith.constant dense<0.000000e+00> : vector<16x128xf32>
    %46 = tpu.matmul %43, %45, %cst_47 {dimension_numbers = #tpu.dot_dimension_numbers<[1], [0], [0], [1], [0, 0, 1, 1], [], []>} : vector<16x128xbf16>, vector<128x128xbf16>, vector<16x128xf32> -> vector<16x128xf32>
    %47 = arith.addf %41, %46 : vector<16x128xf32>
    %c2_48 = arith.constant 2 : index
    %c0_49 = arith.constant 0 : index
    %48 = vector.load %arg7[%c2_48, %c0_49] : memref<18x128xf32, #tpu.memory_space<vmem>>, vector<16x128xf32>
    %49 = arith.truncf %48 : vector<16x128xf32> to vector<16x128xbf16>
    %c2_50 = arith.constant 2 : index
    %c0_51 = arith.constant 0 : index
    %c0_52 = arith.constant 0 : index
    %50 = vector.load %arg3[%c2_50, %c0_51, %c0_52] : memref<3x128x128xbf16, #tpu.memory_space<vmem>>, vector<1x128x128xbf16>
    %51 = vector.shape_cast %50 : vector<1x128x128xbf16> to vector<128x128xbf16>
    %cst_53 = arith.constant dense<0.000000e+00> : vector<16x128xf32>
    %52 = tpu.matmul %49, %51, %cst_53 {dimension_numbers = #tpu.dot_dimension_numbers<[1], [0], [0], [1], [0, 0, 1, 1], [], []>} : vector<16x128xbf16>, vector<128x128xbf16>, vector<16x128xf32> -> vector<16x128xf32>
    %53 = arith.addf %47, %52 : vector<16x128xf32>
    %54 = arith.truncf %3 : vector<16x64xf32> to vector<16x64xbf16>
    %c0_54 = arith.constant 0 : index
    %c0_55 = arith.constant 0 : index
    %55 = vector.load %arg4[%c0_54, %c0_55] : memref<64x128xbf16, #tpu.memory_space<vmem>>, vector<64x128xbf16>
    %cst_56 = arith.constant dense<0.000000e+00> : vector<16x128xf32>
    %56 = tpu.matmul %54, %55, %cst_56 {dimension_numbers = #tpu.dot_dimension_numbers<[1], [0], [0], [1], [0, 0, 1, 1], [], []>} : vector<16x64xbf16>, vector<64x128xbf16>, vector<16x128xf32> -> vector<16x128xf32>
    %57 = arith.addf %56, %53 : vector<16x128xf32>
    %c0_57 = arith.constant 0 : index
    %c0_58 = arith.constant 0 : index
    %c0_59 = arith.constant 0 : index
    %58 = vector.load %arg5[%c0_57, %c0_58, %c0_59] : memref<1x16x128xf32, #tpu.memory_space<vmem>>, vector<1x16x128xf32>
    %59 = vector.shape_cast %58 : vector<1x16x128xf32> to vector<16x128xf32>
    %60 = vector.shape_cast %57 : vector<16x128xf32> to vector<1x16x128xf32>
    tpu.vector_store %arg5[%c0_57, %c0_58, %c0_59], %60 {strides = array<i32>} : memref<1x16x128xf32, #tpu.memory_space<vmem>>, vector<1x16x128xf32>,
    return
  }
  func.func @transform_0(%arg0: i32) -> (i32, i32, i32) {
    %c0_i32 = arith.constant 0 : i32
    %c0_i32_0 = arith.constant 0 : i32
    %c0_i32_1 = arith.constant 0 : i32
    return %arg0, %c0_i32, %c0_i32_0 : i32, i32, i32
  }
  func.func @transform_1(%arg0: i32) -> (i32, i32, i32) {
    %c0_i32 = arith.constant 0 : i32
    %c0_i32_0 = arith.constant 0 : i32
    %c0_i32_1 = arith.constant 0 : i32
    %c0_i32_2 = arith.constant 0 : i32
    return %c0_i32, %c0_i32_0, %c0_i32_1 : i32, i32, i32
  }
  func.func @transform_2(%arg0: i32) -> (i32, i32, i32) {
    %c0_i32 = arith.constant 0 : i32
    %c0_i32_0 = arith.constant 0 : i32
    %c0_i32_1 = arith.constant 0 : i32
    %c0_i32_2 = arith.constant 0 : i32
    return %c0_i32, %c0_i32_0, %c0_i32_1 : i32, i32, i32
  }
  func.func @transform_3(%arg0: i32) -> (i32, i32) {
    %c0_i32 = arith.constant 0 : i32
    %c0_i32_0 = arith.constant 0 : i32
    %c0_i32_1 = arith.constant 0 : i32
    return %c0_i32, %c0_i32_0 : i32, i32
  }
  func.func @transform_4(%arg0: i32) -> (i32, i32, i32) {
    %c0_i32 = arith.constant 0 : i32
    %c0_i32_0 = arith.constant 0 : i32
    %c0_i32_1 = arith.constant 0 : i32
    return %arg0, %c0_i32, %c0_i32_0 : i32, i32, i32
  }
}

</mosaic_0001>

<bundles_post_ra>
// kernel: tpu_custom_call.1
= control target key start
LH: loop header
LB: loop body
LE: loop exit
PB: predicated region body
PF: predicated region fallthrough
CT: control target
= control target key end

     0   :  { %9 = vsyncpa [#allocation5], 0  ;;  %s1983_s0 = inlined_call_operand.hbm [shape: f32[2,16,64], index: 0, kind: input, shape index: {}]   ;;  %s1984_s1 = inlined_call_operand.hbm [shape: bf16[3,64,128], index: 1, kind: input, shape index: {}]   ;;  %s1985_s2 = inlined_call_operand.hbm [shape: bf16[3,128,128], index: 2, kind: input, shape index: {}]   ;;  %s1986_s3 = inlined_call_operand.hbm [shape: bf16[64,128], index: 3, kind: input, shape index: {}]   ;;  %s1987_s4 = inlined_call_operand.hbm [shape: f32[2,16,128], index: 4, kind: output, shape index: {}]  }
   0x1   :  { %11 = vsyncpa [#allocation5 + $0x1], 0 }
   0x2   :  { %12 = vsyncpa [#allocation8], 0 }
   0x3   :  { %13 = vsyncpa [#allocation11], 0 }
   0x4   :  { %14 = vsyncpa [#allocation6], 0 }
   0x5   :  { %16 = vsyncpa [#allocation6 + $0x1], 0  ;;  %s1633_s15 = smov 0   ;;  %s1635_s16 = smov 0  }
   0x6   :  { %s1637_s17 = smov 0   ;;  %s1639_s18 = smov 0  }
   0x7 LB: > { %s1654_s19 = sadd.s32 4294967295, %s1593_s18   ;;  %s1041_s20 = sadd.s32 4294967294, %s1593_s18   ;;  %s1593_s18 = sphi %s1639_s18, %s2010_s18   ;;  %s1589_s17 = sphi %s1637_s17, %s2009_s17   ;;  %s1585_s16 = sphi %s1635_s16, %s2008_s16   ;;  %s1581_s15 = sphi %s1633_s15, %s2007_s15  }
   0x8   : > { %p42_p0 = scmp.ne.s32.totalorder %s1585_s16, %s1581_s15  ;;  %p1988_p1 = scmp.eq.s32.totalorder %s1654_s19, 0 }
   0x9   : > { %p135_p3 = scmp.eq.s32.totalorder %s1041_s20, 1  ;;  %p1042_p5 = scmp.ge.s32.totalorder %s1593_s18, 1 }
   0xa   : > { %p1663_p4 = por %p1988_p1, %p42_p0  ;;  %p142_p7 = scmp.lt.s32.totalorder %s1593_s18, 3 }
   0xb   : > { %p1668_p6 = por %p135_p3, %p42_p0  ;;  %s1595_s24 = smov [#allocation7]  }
   0xc   : > { %s1991_s21 = scalar_select %p1663_p4, 1, 0 }
   0xd   : > { %s1992_s22 = scalar_select %p1668_p6, 1, 0 }
   0xe   : > { %p1673_p8 = pnand %p1042_p5, %p142_p7  ;;  %s154_s25 = sshll.u32 %s1595_s24, 4  ;;  %s1677_s25 = int_to_ptr.vmem [resolvable:$true] %s154_s25 }
   0xf   : > { %s1596_s27 = smov [#allocation9]   ;;  %s1597_s29 = smov [#allocation10]  }
  0x10   : > { %s1993_s23 = scalar_select %p1673_p8, 1, 0 }
  0x11   : > { %p1296_p9 = pneg %p1673_p8  ;;  %s167_s28 = sshll.u32 %s1596_s27, 4  ;;  %s1688_s28 = int_to_ptr.vmem [resolvable:$true] %s167_s28 }
  0x12   : > { %s1690_s30 = sshll.u32 %s1597_s29, 4  ;;  %s1405_s7 = scalar_lea.hbm %s1984_s1, 1536  ;;  %s181_s30 = int_to_ptr.vmem [resolvable:$true] %s1690_s30 }
  0x13   : > { %p1684_p11 = pnand %p1296_p9, %p1988_p1  ;;  %p1406_p12 = scmp.ne.s32.totalorder %s1984_s1, %s1405_s7 }
  0x14   : > { %p1412_p5 = scmp.lt.u32.totalorder %s1405_s7, %s1984_s1 }
  0x15   : > { %p1700_p13 = pneg %p1684_p11 }
  0x17   : > { %p1408_p0 = pnand %p1700_p13, %p1406_p12 }
  0x19   : > { %p1409_p3 = pneg %p1408_p0 }
  0x1b   : > { %p1414_p7 = pnand %p1412_p5, %p1409_p3 }
  0x1d   : > { %1417 = shalt.err (!%p1414_p7)
}
  0x1e   : > { %s1418_s13 = scalar_lea.vmem %s1677_s25, 1536  ;;  %p1426_p2 = scmp.lt.s32.totalorder %s1677_s25, %s1677_s25 }
  0x1f   : > { %p1419_p9 = scmp.ne.s32.totalorder %s1677_s25, %s1418_s13  ;;  %p1427_p6 = scmp.lt.s32.totalorder %s1418_s13, %s1418_s13 }
  0x21   : > { %p1421_p10 = pnand %p1419_p9, %p1700_p13  ;;  %p1428_p12 = por %p1427_p6, %p1426_p2 }
  0x23   : > { %p1422_p1 = pneg %p1421_p10 }
  0x25   : > { %p1429_p0 = pnand %p1428_p12, %p1422_p1 }
  0x27   : > { %1432 = shalt.err (!%p1429_p0)
}
  0x28   : > { %s1598_s14 = smov 64   ;;  %s1599_s20 = smov 4  }
  0x29   : > { %1299 = dma.hbm_to_vmem [thread:$0]  (!%p1684_p11), %s1984_s1, 1536, %s1677_s25, [#allocation8], %s1598_s14, %s1598_s14, %s1599_s20  }
  0x2a   : > { %s1433_s6 = scalar_lea.hbm %s1985_s2, 3072 }
  0x2b   : > { %p1434_p1 = scmp.ne.s32.totalorder %s1985_s2, %s1433_s6  ;;  %p1440_p10 = scmp.lt.u32.totalorder %s1433_s6, %s1985_s2 }
  0x2d   : > { %p1436_p2 = pnand %p1434_p1, %p1700_p13 }
  0x2f   : > { %p1437_p6 = pneg %p1436_p2 }
  0x31   : > { %p1442_p3 = pnand %p1440_p10, %p1437_p6 }
  0x33   : > { %1445 = shalt.err (!%p1442_p3)
}
  0x34   : > { %s1446_s25 = scalar_lea.vmem %s1688_s28, 3072  ;;  %p1454_p12 = scmp.lt.s32.totalorder %s1688_s28, %s1688_s28 }
  0x35   : > { %p1447_p5 = scmp.ne.s32.totalorder %s1688_s28, %s1446_s25  ;;  %p1455_p0 = scmp.lt.s32.totalorder %s1446_s25, %s1446_s25 }
  0x37   : > { %p1449_p7 = pnand %p1447_p5, %p1700_p13  ;;  %p1456_p1 = por %p1455_p0, %p1454_p12 }
  0x39   : > { %p1450_p9 = pneg %p1449_p7 }
  0x3b   : > { %p1457_p2 = pnand %p1456_p1, %p1450_p9 }
  0x3d   : > { %1460 = shalt.err (!%p1457_p2)
}
  0x3e   : > { %1302 = dma.hbm_to_vmem [thread:$0]  (!%p1684_p11), %s1985_s2, 3072, %s1688_s28, [#allocation8], %s1598_s14, %s1598_s14, %s1599_s20  }
  0x3f   : > { %s1461_s29 = scalar_lea.hbm %s1986_s3, 512 }
  0x40   : > { %p1462_p6 = scmp.ne.s32.totalorder %s1986_s3, %s1461_s29  ;;  %p1468_p5 = scmp.lt.u32.totalorder %s1461_s29, %s1986_s3 }
  0x42   : > { %p1464_p10 = pnand %p1462_p6, %p1700_p13 }
  0x44   : > { %p1465_p3 = pneg %p1464_p10 }
  0x46   : > { %p1470_p7 = pnand %p1468_p5, %p1465_p3 }
  0x48   : > { %1473 = shalt.err (!%p1470_p7)
}
  0x49   : > { %s1474_s9 = scalar_lea.vmem %s181_s30, 512  ;;  %p1482_p1 = scmp.lt.s32.totalorder %s181_s30, %s181_s30 }
  0x4a   : > { %p1475_p9 = scmp.ne.s32.totalorder %s181_s30, %s1474_s9  ;;  %p1483_p2 = scmp.lt.s32.totalorder %s1474_s9, %s1474_s9 }
  0x4c   : > { %p1477_p12 = pnand %p1475_p9, %p1700_p13  ;;  %p1484_p4 = por %p1483_p2, %p1482_p1 }
  0x4e   : > { %p1478_p0 = pneg %p1477_p12 }
  0x50   : > { %p1485_p8 = pnand %p1484_p4, %p1478_p0 }
  0x52   : > { %1488 = shalt.err (!%p1485_p8)
}
  0x53   : > { %1305 = dma.hbm_to_vmem [thread:$0]  (!%p1684_p11), %s1986_s3, 512, %s181_s30, [#allocation11], %s1598_s14, %s1598_s14, %s1599_s20  }
  0x54   : > { %s1773_s10 = sadd.s32 1, %s1593_s18   ;;  %s29_s25 = sadd.s32 1, %s1589_s17 }
  0x55   : > { %s26_s26 = ssub.s32 %s1593_s18, %s1773_s10  ;;  %p36_p8 = scmp.ne.s32.totalorder %s1589_s17, %s1585_s16 }
  0x56   : > { %p27_p4 = scmp.eq.s32.totalorder %s26_s26, 0  ;;  %p37_p13 = scmp.eq.s32.totalorder %s1593_s18, 0 }
  0x57   : > { %p1317_p6 = scmp.lt.s32.totalorder %s1593_s18, 2  ;;  %p1996_p3 = scmp.eq.s32.totalorder %s1654_s19, 1 }
  0x58   : > { %s1783_s12 = scalar_select %p27_p4, %s1589_s17, %s29_s25  }
  0x59   : > { %p38_p10 = por %p37_p13, %p36_p8  ;;  %p1787_p5 = por %p1996_p3, %p36_p8 }
  0x5a   : > { %s194_s24 = sand.u32 1, %s1589_s17   ;;  %s1105_s27 = sshll.u32 %s1593_s18, 8 }
  0x5b   : > { %s1047_s30 = sshll.u32 %s194_s24, 4  ;;  %s1796_s29 = scalar_lea.hbm %s1983_s0, %s1105_s27 }
  0x5c   : > { %s198_s5 = scalar_lea.vmem [#allocation4], %s1047_s30  ;;  %p1798_p11 = pnand %p1317_p6, %p38_p10 }
  0x5d   : > { %s205_s6 = sshll.u32 %s198_s5, 4  ;;  %s1804_s8 = scalar_lea.sflag [#allocation5], %s194_s24  ;;  %s1802_s6 = int_to_ptr.vmem [resolvable:$true] %s205_s6 }
  0x5e   : > { %s1489_s9 = scalar_lea.hbm %s1796_s29, 256  ;;  %p1491_p9 = pneg %p1798_p11 }
  0x5f   : > { %p1490_p7 = scmp.ne.s32.totalorder %s1796_s29, %s1489_s9  ;;  %s1494_s26 = scalar_lea.hbm %s1983_s0, 512 }
  0x60   : > { %p1495_p1 = scmp.lt.u32.totalorder %s1796_s29, %s1983_s0  ;;  %p1496_p2 = scmp.lt.u32.totalorder %s1494_s26, %s1489_s9 }
  0x61   : > { %p1492_p12 = pnand %p1491_p9, %p1490_p7  ;;  %p1498_p8 = scmp.lt.u32.totalorder %s1489_s9, %s1796_s29 }
  0x62   : > { %p1497_p4 = por %p1496_p2, %p1495_p1 }
  0x63   : > { %p1493_p0 = pneg %p1492_p12 }
  0x64   : > { %p1499_p13 = por %p1498_p8, %p1497_p4 }
  0x66   : > { %p1500_p6 = pnand %p1499_p13, %p1493_p0 }
  0x68   : > { %1503 = shalt.err (!%p1500_p6)
}
  0x69   : > { %s1504_s24 = scalar_lea.vmem %s1802_s6, 256  ;;  %s1600_s30 = smov [#allocation4]  }
  0x6a   : > { %p1505_p10 = scmp.ne.s32.totalorder %s1802_s6, %s1504_s24  ;;  %s1509_s14 = sshll.u32 %s1600_s30, 4  ;;  %s1510_s14 = int_to_ptr.vmem [resolvable:$false] %s1509_s14 }
  0x6b   : > { %s1511_s20 = scalar_lea.vmem %s1510_s14, 512  ;;  %p1512_p12 = scmp.lt.s32.totalorder %s1802_s6, %s1510_s14 }
  0x6c   : > { %p1507_p3 = pnand %p1505_p10, %p1491_p9  ;;  %p1513_p1 = scmp.lt.s32.totalorder %s1511_s20, %s1504_s24 }
  0x6e   : > { %p1508_p7 = pneg %p1507_p3  ;;  %p1514_p2 = por %p1513_p1, %p1512_p12 }
  0x70   : > { %p1515_p4 = pnand %p1514_p2, %p1508_p7 }
  0x72   : > { %1518 = shalt.err (!%p1515_p4)
}
  0x73   : > { %s1601_s5 = smov 128   ;;  %s1602_s9 = smov 8  }
  0x74   : > { %1309 = dma.hbm_to_vmem [thread:$0]  (!%p1798_p11), %s1796_s29, 256, %s1802_s6, %s1804_s8, %s1601_s5, %s1601_s5, %s1602_s9  }
  0x75   : > { %p1999_p9 = scmp.ne.s32.totalorder %s1993_s23, 0 }
  0x76   : > { %s1835_s28 = sand.u32 (!%p1999_p9), 1, %s1585_s16   ;;  %p2000_p0 = scmp.ne.s32.totalorder (!%p1999_p9), %s1991_s21, 0 }
  0x77   : > { %217 = sbr.rel (%p1999_p9) target bundleno = 689 (0x2b1), region = 36  ;;  %s1051_s11 = sshll.u32 (!%p1999_p9), %s1835_s28, 4 }
  0x78   : > { %s220_s26 = scalar_lea.sflag (!%p1999_p9), [#allocation5], %s1835_s28  ;;  %s223_s25 = scalar_lea.vmem (!%p1999_p9), [#allocation4], %s1051_s11 }
  0x7e   : > { %1564 = dma.done.wait (%p2000_p0), %s220_s26, 256  }
  0x7f   : > { %1566 = vsyncadd (%p2000_p0), %s220_s26, 4294967040  ;;  %p2001_p11 = scmp.eq.s32.totalorder %s1654_s19, 0 }
  0x81   : > { %1568 = dma.done.wait (%p2001_p11), [#allocation8], 4608   ;;  %p2002_p8 = pmov %p2001_p11 }
  0x83   : > { %1570 = vsyncadd (%p2002_p8), [#allocation8], 4294962688  ;;  %p2003_p13 = pmov %p2002_p8 }
  0x84   : > { %p2004_p6 = pmov %p2002_p8 }
  0x85   : > { %1572 = dma.done.wait (%p2003_p13), [#allocation11], 512  }
  0x86   : > { %1574 = vsyncadd (%p2004_p6), [#allocation11], 4294966784  ;;  %vm265_vm0 = vcmask 516096   ;;  %v1603_v0 = vmov 0.0   ;;  %vm1604_vm1 = vmmov 0   ;;  %v1365_v1 = vld [vmem:[#allocation7 + $0x20] sm:$0xff]  }
  0x87   : > { %1154 = vmatprep.subr.bf16.mxu0 %v1603_v0  ;;  %514 = vst [vmem:[#allocation3] sm:$0x1] %v1603_v0  ;;  %515 = vst [vmem:[#allocation3 + $0x11] sm:$0x1] %v1603_v0  ;;  %1162 = vmatprep.mubr.msk.bf16.mxu0 %vm1604_vm1, %v1603_v0  ;;  %v1366_v2 = vld [vmem:[#allocation7 + $0x28] sm:$0xff]   ;;  %v1864_v3 = vld [vmem:[%s223_s25] sm:$0xff] }
  0x88   : > { %266 = vst.msk [vmem:[#allocation2] sm:$0x1] %vm265_vm0, %v1603_v0  ;;  %267 = vst.msk [vmem:[#allocation2 + $0x11] sm:$0x1] %vm265_vm0, %v1603_v0  ;;  %1210 = vmatprep.subr.bf16.mxu1 %v1603_v0  ;;  %1226 = vmatprep.mubr.msk.bf16.mxu1 %vm1604_vm1, %v1603_v0  ;;  %v1866_v4 = vld [vmem:[%s223_s25 + $0x8] sm:$0xff]  ;;  %vm268_vm2 = vcmask 523264  }
  0x89   : > { %1155 = vmatpush3.bf16.msra.mxu0 %v1365_v1  ;;  %v1367_v5 = vld [vmem:[#allocation7 + $0x30] sm:$0xff]   ;;  %v263_v6 = vmax.f32 %v1864_v3, 0.0  ;;  %v264_v7 = vmax.f32 %v1866_v4, 0.0  ;;  %v1368_v8 = vld [vmem:[#allocation7 + $0x38] sm:$0xff]   ;;  %v1377_v9 = vld [vmem:[#allocation9] sm:$0xff]   ;;  %s259_s21 = scalar_lea.vmem [#allocation12], %s1051_s11 }
  0x8a   : > { %1156 = vmatprep.subr.bf16.mxu0 %v1603_v0  ;;  %v1369_v12 = vld [vmem:[#allocation7] sm:$0xff]   ;;  %1211 = vmatpush3.bf16.msra.mxu1 %v1377_v9  ;;  %v1379_v14 = vld [vmem:[#allocation9 + $0x8] sm:$0xff]   ;;  %v1381_v16 = vld [vmem:[#allocation9 + $0x10] sm:$0xff]   ;;  %s939_s23 = sshll.u32 %s259_s21, 4  ;;  %s1106_s29 = sshll.u32 %s1654_s19, 8  ;;  %s1934_s23 = int_to_ptr.vmem [resolvable:$true] %s939_s23 }
  0x8b   : > { %269 = vst.msk [vmem:[#allocation2 + $0x1] sm:$0xff] %vm268_vm2, %v263_v6  ;;  %270 = vst.msk [vmem:[#allocation2 + $0x9] sm:$0xff] %vm268_vm2, %v264_v7  ;;  %1212 = vmatprep.subr.bf16.mxu1 %v1603_v0  ;;  %v1370_v15 = vld [vmem:[#allocation7 + $0x8] sm:$0xff]   ;;  %v1371_v17 = vld [vmem:[#allocation7 + $0x10] sm:$0xff]   ;;  %s1939_s8 = scalar_lea.hbm %s1987_s4, %s1106_s29  ;;  %s926_s27 = scalar_lea.sflag [#allocation6], %s1835_s28 }
  0x8c   : > { %v1383_v18 = vld [vmem:[#allocation9 + $0x18] sm:$0xff]   ;;  %v1385_v22 = vld [vmem:[#allocation9 + $0x20] sm:$0xff]   ;;  %v1374_v25 = vld [vmem:[#allocation7 + $0x48] sm:$0xff]   ;;  %s1519_s19 = scalar_lea.vmem %s1934_s23, 256  ;;  %s1605_s24 = smov [#allocation12]  }
  0x8d   : > { %1157 = vmatpush3.bf16.msra.mxu0 %v1366_v2  ;;  %v1372_v19 = vld [vmem:[#allocation7 + $0x18] sm:$0xff]   ;;  %v1373_v23 = vld [vmem:[#allocation7 + $0x40] sm:$0xff]   ;;  %v1375_v26 = vld [vmem:[#allocation7 + $0x50] sm:$0xff]   ;;  %p1520_p10 = scmp.ne.s32.totalorder %s1934_s23, %s1519_s19  ;;  %s1523_s30 = sshll.u32 %s1605_s24, 4  ;;  %s1524_s30 = int_to_ptr.vmem [resolvable:$false] %s1523_s30 }
  0x8e   : > { %1158 = vmatprep.subr.bf16.mxu0 %v1603_v0  ;;  %1213 = vmatpush3.bf16.msra.mxu1 %v1379_v14  ;;  %v1376_v27 = vld [vmem:[#allocation7 + $0x58] sm:$0xff]   ;;  %v1378_v31 = vld [vmem:[#allocation9 + $0x40] sm:$0xff]   ;;  %v1380_v32 = vld [vmem:[#allocation9 + $0x48] sm:$0xff]   ;;  %s1525_s14 = scalar_lea.vmem %s1524_s30, 512  ;;  %p1526_p12 = scmp.lt.s32.totalorder %s1934_s23, %s1524_s30 }
  0x8f   : > { %1214 = vmatprep.subr.bf16.mxu1 %v1603_v0  ;;  %v1382_v33 = vld [vmem:[#allocation9 + $0x50] sm:$0xff]   ;;  %v1384_v34 = vld [vmem:[#allocation9 + $0x58] sm:$0xff]   ;;  %v1386_v35 = vld [vmem:[#allocation9 + $0x60] sm:$0xff]   ;;  %p1521_p3 = pnand %p1520_p10, %p1787_p5  ;;  %p1527_p1 = scmp.lt.s32.totalorder %s1525_s14, %s1519_s19 }
  0x90   : > { %v1388_v36 = vld [vmem:[#allocation9 + $0x68] sm:$0xff]   ;;  %v1390_v37 = vld [vmem:[#allocation9 + $0x70] sm:$0xff]   ;;  %v1392_v39 = vld [vmem:[#allocation9 + $0x78] sm:$0xff]  }
  0x91   : > { %1159 = vmatpush3.bf16.msra.mxu0 %v1367_v5  ;;  %v1387_v38 = vld [vmem:[#allocation9 + $0x28] sm:$0xff]   ;;  %v1389_v40 = vld [vmem:[#allocation9 + $0x30] sm:$0xff]   ;;  %v1391_v41 = vld [vmem:[#allocation9 + $0x38] sm:$0xff]   ;;  %p1522_p7 = pneg %p1521_p3  ;;  %p1528_p2 = por %p1527_p1, %p1526_p12 }
  0x92   : > { %1160 = vmatprep.subr.bf16.mxu0 %v1603_v0  ;;  %v282_v10 = vld [vmem:[#allocation2 + $0x1] sm:$0xff]  ;;  %v283_v11 = vld [vmem:[#allocation2 + $0x9] sm:$0xff]  ;;  %1215 = vmatpush3.bf16.msra.mxu1 %v1381_v16  ;;  %v1394_v53 = vld [vmem:[#allocation9 + $0x88] sm:$0xff]  }
  0x93   : > { %v284_v13 = vpack.c.bf16 %v283_v11, %v282_v10  ;;  %v271_v20 = vld [vmem:[#allocation2] sm:$0xff]  ;;  %v272_v21 = vld [vmem:[#allocation2 + $0x8] sm:$0xff]  ;;  %1216 = vmatprep.subr.bf16.mxu1 %v1603_v0  ;;  %v1393_v51 = vld [vmem:[#allocation9 + $0x80] sm:$0xff]   ;;  %p1529_p4 = pnand %p1528_p2, %p1522_p7 }
  0x94   : > { %v273_v24 = vpack.c.bf16 %v272_v21, %v271_v20  ;;  %v430_v28 = vld [vmem:[#allocation2 + $0x2] sm:$0xff]  ;;  %v431_v29 = vld [vmem:[#allocation2 + $0xa] sm:$0xff]  ;;  %v1398_v57 = vld [vmem:[#allocation9 + $0xa8] sm:$0xff]  }
  0x95   : > { %1161 = vmatpush3.bf16.msra.mxu0 %v1368_v8  ;;  %v432_v30 = vpack.c.bf16 %v431_v29, %v430_v28  ;;  %v1395_v54 = vld [vmem:[#allocation9 + $0x90] sm:$0xff]   ;;  %v1396_v55 = vld [vmem:[#allocation9 + $0x98] sm:$0xff]   ;;  %v1397_v56 = vld [vmem:[#allocation9 + $0xa0] sm:$0xff]   ;;  %v846_v8 = vpack.c.bf16 %v264_v7, %v263_v6 }
  0x96   : > { %1166 = vmatprep.subr.bf16.mxu0 %v1603_v0  ;;  %1217 = vmatpush3.bf16.msra.mxu1 %v1383_v18  ;;  %v1399_v58 = vld [vmem:[#allocation9 + $0xb0] sm:$0xff]   ;;  %v1400_v59 = vld [vmem:[#allocation9 + $0xb8] sm:$0xff]   ;;  %v1401_v62 = vld [vmem:[#allocation10] sm:$0xff]  }
  0x97   : > { %1218 = vmatprep.subr.bf16.mxu1 %v1603_v0  ;;  %v1402_v1 = vld [vmem:[#allocation10 + $0x8] sm:$0xff]   ;;  %v1403_v2 = vld [vmem:[#allocation10 + $0x10] sm:$0xff]   ;;  %v1404_v5 = vld [vmem:[#allocation10 + $0x18] sm:$0xff]  }
  0x98   : > { %1163 = vmatmul.mubr.msk.bf16.vlgmr.msra.gmra.mrb[0].mxu0 %vm268_vm2, %v284_v13 }
  0x99   : > { %1167 = vmatpush3.bf16.msra.mxu0 %v1369_v12  ;;  %1174 = vmatprep.mubr.msk.bf16.mxu0 %vm1604_vm1, %v1603_v0 }
  0x9a   : > { %1168 = vmatprep.subr.bf16.mxu0 %v1603_v0  ;;  %1219 = vmatpush3.bf16.msra.mxu1 %v1385_v22 }
  0x9b   : > { %1220 = vmatprep.subr.bf16.mxu1 %v1603_v0 }
  0x9d   : > { %1169 = vmatpush3.bf16.msra.mxu0 %v1370_v15 }
  0x9e   : > { %1170 = vmatprep.subr.bf16.mxu0 %v1603_v0  ;;  %1221 = vmatpush3.bf16.msra.mxu1 %v1387_v38 }
  0x9f   : > { %1222 = vmatprep.subr.bf16.mxu1 %v1603_v0 }
  0xa1   : > { %1171 = vmatpush3.bf16.msra.mxu0 %v1371_v17 }
  0xa2   : > { %1172 = vmatprep.subr.bf16.mxu0 %v1603_v0  ;;  %1223 = vmatpush3.bf16.msra.mxu1 %v1389_v40 }
  0xa3   : > { %1224 = vmatprep.subr.bf16.mxu1 %v1603_v0 }
  0xa5   : > { %1173 = vmatpush3.bf16.msra.mxu0 %v1372_v19 }
  0xa6   : > { %1178 = vmatprep.subr.bf16.mxu0 %v1603_v0  ;;  %1225 = vmatpush3.bf16.msra.mxu1 %v1391_v41 }
  0xa7   : > { %1230 = vmatprep.subr.bf16.mxu1 %v1603_v0 }
  0xa8   : > { %1175 = vmatmul.mubr.msk.bf16.vlgmr.msra.gmra.mrb[0].mxu0 %vm268_vm2, %v273_v24 }
  0xa9   : > { %1179 = vmatpush3.bf16.msra.mxu0 %v1373_v23  ;;  %1186 = vmatprep.mubr.msk.bf16.mxu0 %vm1604_vm1, %v1603_v0 }
  0xaa   : > { %1180 = vmatprep.subr.bf16.mxu0 %v1603_v0 }
  0xad   : > { %1181 = vmatpush3.bf16.msra.mxu0 %v1374_v25 }
  0xae   : > { %1182 = vmatprep.subr.bf16.mxu0 %v1603_v0 }
  0xb1   : > { %1183 = vmatpush3.bf16.msra.mxu0 %v1375_v26 }
  0xb2   : > { %1184 = vmatprep.subr.bf16.mxu0 %v1603_v0 }
  0xb5   : > { %1185 = vmatpush3.bf16.msra.mxu0 %v1376_v27 }
  0xb6   : > { %1190 = vmatprep.subr.bf16.mxu0 %v1603_v0 }
  0xb8   : > { %1187 = vmatmul.mubr.msk.bf16.vlgmr.msra.gmra.mrb[0].mxu0 %vm268_vm2, %v432_v30 }
  0xb9   : > { %1191 = vmatpush3.bf16.msra.mxu0 %v1378_v31  ;;  %1206 = vmatprep.mubr.msk.bf16.mxu0 %vm1604_vm1, %v1603_v0 }
  0xba   : > { %1192 = vmatprep.subr.bf16.mxu0 %v1603_v0 }
  0xbd   : > { %1193 = vmatpush3.bf16.msra.mxu0 %v1380_v32 }
  0xbe   : > { %1194 = vmatprep.subr.bf16.mxu0 %v1603_v0 }
  0xc1   : > { %1195 = vmatpush3.bf16.msra.mxu0 %v1382_v33 }
  0xc2   : > { %1196 = vmatprep.subr.bf16.mxu0 %v1603_v0 }
  0xc5   : > { %1197 = vmatpush3.bf16.msra.mxu0 %v1384_v34 }
  0xc6   : > { %1198 = vmatprep.subr.bf16.mxu0 %v1603_v0 }
  0xc9   : > { %1199 = vmatpush3.bf16.msra.mxu0 %v1386_v35 }
  0xca   : > { %1200 = vmatprep.subr.bf16.mxu0 %v1603_v0 }
  0xcd   : > { %1201 = vmatpush3.bf16.msra.mxu0 %v1388_v36 }
  0xce   : > { %1202 = vmatprep.subr.bf16.mxu0 %v1603_v0 }
  0xd1   : > { %1203 = vmatpush3.bf16.msra.mxu0 %v1390_v37 }
  0xd2   : > { %1204 = vmatprep.subr.bf16.mxu0 %v1603_v0 }
  0xd5   : > { %1205 = vmatpush3.bf16.msra.mxu0 %v1392_v39 }
 0x18b   : > { %v503_v42 = vpop.f32.mrb[0].mxu0 }
 0x18c   : > { %v512_v43 = vmax.f32 %v503_v42, 0.0  ;;  %v1188_v44 = vpop.f32.mrb[1].mxu0 }
 0x18d   : > { %v506_v45 = vpop.f32.mrb[2].mxu0 }
 0x18e   : > { %516 = vst [vmem:[#allocation3 + $0x1] sm:$0xff] %v512_v43  ;;  %v513_v46 = vmax.f32 %v506_v45, 0.0  ;;  %v1189_v47 = vpop.f32.mrb[3].mxu0 }
 0x190   : > { %517 = vst [vmem:[#allocation3 + $0x9] sm:$0xff] %v513_v46  ;;  %v539_v48 = vpack.c.bf16 %v513_v46, %v512_v43 }
 0x192   : > { %1207 = vmatmul.mubr.bf16.vlgmr.msra.gmra.mrb[4].mxu0 %v539_v48 }
 0x195   : > { %v518_v49 = vld [vmem:[#allocation3] sm:$0xff] }
 0x197   : > { %v519_v50 = vld [vmem:[#allocation3 + $0x8] sm:$0xff] }
 0x198   : > { %v520_v52 = vpack.c.bf16 %v519_v50, %v518_v49  ;;  %v735_v60 = vld [vmem:[#allocation3 + $0x2] sm:$0xff]  ;;  %v736_v61 = vld [vmem:[#allocation3 + $0xa] sm:$0xff] }
 0x199   : > { %v737_v63 = vpack.c.bf16 %v736_v61, %v735_v60 }
 0x19a   : > { %1227 = vmatmul.mubr.bf16.vlgmr.msra.gmra.mrb[0].mxu1 %v520_v52 }
 0x19b   : > { %1231 = vmatpush3.bf16.msra.mxu1 %v1393_v51  ;;  %1246 = vmatprep.mubr.msk.bf16.mxu1 %vm1604_vm1, %v1603_v0 }
 0x19c   : > { %1232 = vmatprep.subr.bf16.mxu1 %v1603_v0 }
 0x19f   : > { %1233 = vmatpush3.bf16.msra.mxu1 %v1394_v53 }
 0x1a0   : > { %1234 = vmatprep.subr.bf16.mxu1 %v1603_v0 }
 0x1a3   : > { %1235 = vmatpush3.bf16.msra.mxu1 %v1395_v54 }
 0x1a4   : > { %1236 = vmatprep.subr.bf16.mxu1 %v1603_v0 }
 0x1a7   : > { %1237 = vmatpush3.bf16.msra.mxu1 %v1396_v55 }
 0x1a8   : > { %1238 = vmatprep.subr.bf16.mxu1 %v1603_v0 }
 0x1ab   : > { %1239 = vmatpush3.bf16.msra.mxu1 %v1397_v56 }
 0x1ac   : > { %1240 = vmatprep.subr.bf16.mxu1 %v1603_v0 }
 0x1af   : > { %1241 = vmatpush3.bf16.msra.mxu1 %v1398_v57 }
 0x1b0   : > { %1242 = vmatprep.subr.bf16.mxu1 %v1603_v0 }
 0x1b3   : > { %1243 = vmatpush3.bf16.msra.mxu1 %v1399_v58 }
 0x1b4   : > { %1244 = vmatprep.subr.bf16.mxu1 %v1603_v0 }
 0x1b7   : > { %1245 = vmatpush3.bf16.msra.mxu1 %v1400_v59 }
 0x1b8   : > { %1250 = vmatprep.subr.bf16.mxu1 %v1603_v0 }
 0x1ba   : > { %1247 = vmatmul.mubr.bf16.vlgmr.msra.gmra.mrb[0].mxu1 %v737_v63 }
 0x1bb   : > { %1251 = vmatpush3.bf16.msra.mxu1 %v1401_v62  ;;  %1258 = vmatprep.mubr.msk.bf16.mxu1 %vm1604_vm1, %v1603_v0 }
 0x1bc   : > { %1252 = vmatprep.subr.bf16.mxu1 %v1603_v0 }
 0x1bf   : > { %1253 = vmatpush3.bf16.msra.mxu1 %v1402_v1 }
 0x1c0   : > { %1254 = vmatprep.subr.bf16.mxu1 %v1603_v0 }
 0x1c3   : > { %1255 = vmatpush3.bf16.msra.mxu1 %v1403_v2 }
 0x1c4   : > { %1256 = vmatprep.subr.bf16.mxu1 %v1603_v0 }
 0x1c7   : > { %1257 = vmatpush3.bf16.msra.mxu1 %v1404_v5 }
 0x1ca   : > { %1259 = vmatmul.mubr.msk.bf16.vlgmr.msra.gmra.mrb[0].mxu1 %vm268_vm2, %v846_v8 }
 0x265   : > { %v639_v9 = vpop.f32.mrb[4].mxu0 }
 0x266   : > { %v1208_v10 = vpop.f32.mrb[5].mxu0 }
 0x267   : > { %v642_v11 = vpop.f32.mrb[6].mxu0 }
 0x268   : > { %v1209_v12 = vpop.f32.mrb[7].mxu0 }
 0x29d   : > { %v916_v13 = vpop.f32.mrb[0].mxu1 }
 0x29e   : > { %v1262_v0 = vadd.f32 %v916_v13, %v639_v9  ;;  %v1260_v3 = vpop.f32.mrb[1].mxu1 }
 0x29f   : > { %v919_v4 = vpop.f32.mrb[2].mxu1 }
 0x2a0   : > { %923 = vst [vmem:[%s259_s21] sm:$0xff] %v1262_v0  ;;  %v1263_v6 = vadd.f32 %v919_v4, %v642_v11  ;;  %v1261_v7 = vpop.f32.mrb[3].mxu1 }
 0x2a2   : > { %924 = vst [vmem:[%s259_s21 + $0x8] sm:$0xff] %v1263_v6 }
 0x2a3   : > { %1532 = shalt.err (!%p1529_p4)
}
 0x2a4   : > { %s1533_s20 = scalar_lea.hbm %s1939_s8, 256  ;;  %s1537_s11 = scalar_lea.hbm %s1987_s4, 512 }
 0x2a5   : > { %p1534_p9 = scmp.ne.s32.totalorder %s1939_s8, %s1533_s20  ;;  %p1538_p8 = scmp.lt.u32.totalorder %s1939_s8, %s1987_s4 }
 0x2a6   : > { %p1539_p13 = scmp.lt.u32.totalorder %s1537_s11, %s1533_s20  ;;  %p1541_p10 = scmp.lt.u32.totalorder %s1533_s20, %s1939_s8 }
 0x2a7   : > { %p1535_p0 = pnand %p1534_p9, %p1787_p5 }
 0x2a8   : > { %p1540_p6 = por %p1539_p13, %p1538_p8 }
 0x2a9   : > { %p1536_p11 = pneg %p1535_p0 }
 0x2aa   : > { %p1542_p3 = por %p1541_p10, %p1540_p6 }
 0x2ac   : > { %p1543_p7 = pnand %p1542_p3, %p1536_p11 }
 0x2ae   : > { %1546 = shalt.err (!%p1543_p7)
}
 0x2af   : > { %s1606_s21 = smov 128   ;;  %s1607_s29 = smov 8  }
 0x2b0   : > { %1294 = dma.vmem_to_hbm [thread:$0]  (%p1787_p5), %s1934_s23, 256, %s1939_s8, %s926_s27, %s1606_s21, %s1606_s21, %s1607_s29  }
 0x2b1 PF: > { %s954_s6 = sand.u32 1, %s1581_s15   ;;  %p2005_p12 = scmp.ne.s32.totalorder %s1992_s22, 0 }
 0x2b2   : > { %p2006_p1 = scmp.ge.s32.totalorder %s1593_s18, 2  ;;  %s955_s7 = scalar_lea.sflag [#allocation6], %s954_s6 }
 0x2b4   : > { %p1311_p2 = pnand %p2006_p1, %p2005_p12 }
 0x2b6   : > { %1576 = dma.done.wait (!%p1311_p2), %s955_s7, 256  }
 0x2b7   : > { %1578 = vsyncadd (!%p1311_p2), %s955_s7, 4294967040  ;;  %p19_p4 = scmp.ge.s32.totalorder %s1773_s10, 4   ;;  %s2007_s15 = smov %s1585_s16 }
 0x2b8   : > { %s2008_s16 = smov %s1589_s17  ;;  %s2009_s17 = smov %s1783_s12 }
 0x2b9   : > { %s2010_s18 = smov %s1773_s10  ;;  %21 = sbr.rel (!%p19_p4) target bundleno = 7 (0x7), region = 97 }
 0x2c0   :  { %960 = vsyncpa [#allocation5], 1 }
 0x2c1   :  { %962 = vsyncpa [#allocation5 + $0x1], 1 }
 0x2c2   :  { %963 = vsyncpa [#allocation8], 1 }
 0x2c3   :  { %964 = vsyncpa [#allocation11], 1 }
 0x2c4   :  { %965 = vsyncpa [#allocation6], 1 }
 0x2c5   :  { %967 = vsyncpa [#allocation6 + $0x1], 1 }

</bundles_post_ra>
